<compile_context>
chip_gen: v7x
topology: tpu7x:2x2x1
jax: 0.10.0
libtpu: 0.0.40
codegen_flags: <defaults>
</compile_context>

<pallas_src>
import functools

import numpy as np

import jax
import jax.numpy as jnp
from jax import lax
from jax.experimental import pallas as pl
from jax.experimental.pallas import tpu as pltpu


# ---------------------------------------------------------------------------
# upsample-folded weight construction (wrapper side, tiny)
# ---------------------------------------------------------------------------

def _n_row_taps(s):
    # s >= 2: each output row-phase only touches 2 source rows; s == 1: 3.
    return 3 if s == 1 else 2


def _fold_phase_weights(conv_w, s):
    """Fold nearest-upsample(x s) + 3x3/pad-1 conv into per-row-phase weights.

    conv_w: (3, 3, Cin, Cout) HWIO, f32.
    Returns Wf: (s, n_row_taps*3*Cin, s*Cout) with
      Wf[py, (a*3+b)*Cin + ci, px*Cout + co]
        = sum_{dy: (py+dy)//s == row_off(a)} sum_{dx: (px+dx)//s == b-1}
              conv_w[dy+1, dx+1, ci, co]
    so that one matmul per row-phase produces output columns already ordered
    (j, px, co) == lane-dense NHWC-flat output rows.
    """
    assert conv_w.shape[0] == 3 and conv_w.shape[1] == 3
    cin, cout = conv_w.shape[2], conv_w.shape[3]
    nrt = _n_row_taps(s)
    sel = np.zeros((s, nrt, 3, s, 3, 3), np.float32)
    for py in range(s):
        rb = (py - 1) // s + 1                 # padded-row base of the window
        for a in range(nrt):
            oy = rb - 1 + a                    # source-row offset of tap a
            for dy in range(-1, 2):
                if (py + dy) // s != oy:
                    continue
                for px in range(s):
                    for b in range(3):
                        ox = b - 1             # source-col offset of tap b
                        for dx in range(-1, 2):
                            if (px + dx) // s != ox:
                                continue
                            sel[py, a, b, px, dy + 1, dx + 1] = 1.0
    wf = jnp.einsum("yabxuv,uvic->yabixc",
                    jnp.asarray(sel), conv_w.astype(jnp.float32))
    return wf.reshape(s, nrt * 3 * cin, s * cout)


# ---------------------------------------------------------------------------
# in-kernel shared conv (one row-phase of the folded conv for the row tile)
# ---------------------------------------------------------------------------

def _phase_conv(xp_ref, w_ref, r, py, *, t, w_src, cin, s, mm_dtype):
    """xp_ref: (h+2, w+2, Cin) zero-padded source (resident per batch).
    w_ref:  (s, K, s*Cout) folded weights (mm_dtype).
    Returns (t*w_src, s*Cout) f32 with columns ordered (px, co)."""
    nrt = _n_row_taps(s)
    rbp = (py - 1) // s + 1                    # padded-row start offset
    row0 = r * t + rbp
    taps = []
    for a in range(nrt):
        rows = pl.ds(row0 + a, t)
        for b in range(3):
            taps.append(
                xp_ref[rows, pl.ds(b, w_src), :].reshape(t * w_src, cin))
    # im2col patches (t*w, K); cast to bf16 right before the MXU matmul.
    patches = jnp.concatenate(taps, axis=1).astype(mm_dtype)
    return jnp.dot(patches, w_ref[py], preferred_element_type=jnp.float32)


# ---------------------------------------------------------------------------
# pass 1: conv recompute -> per-tile BatchNorm partial statistics
# ---------------------------------------------------------------------------

def _stats_kernel(xp_ref, w_ref, stats_ref, *, t, w_src, cin, s, mm_dtype):
    r = pl.program_id(1)
    ncol = w_ref.shape[-1]                     # s * Cout
    acc = jnp.zeros((2, ncol), jnp.float32)
    for py in range(s):                        # static, short loop
        z = _phase_conv(xp_ref, w_ref, r, py,
                        t=t, w_src=w_src, cin=cin, s=s, mm_dtype=mm_dtype)
        acc = acc + jnp.concatenate(
            [jnp.sum(z, axis=0, keepdims=True),
             jnp.sum(z * z, axis=0, keepdims=True)], axis=0)
    stats_ref[...] = acc                       # per-(batch, tile) partial stats


# ---------------------------------------------------------------------------
# pass 2: conv recompute + BN affine + ReLU, phase-major lane-dense output
# ---------------------------------------------------------------------------

def _conv_bn_relu_kernel(xp_ref, w_ref, scale_ref, shift_ref, out_ref,
                         *, t, w_src, cin, s, mm_dtype):
    r = pl.program_id(1)
    for py in range(s):
        z = _phase_conv(xp_ref, w_ref, r, py,
                        t=t, w_src=w_src, cin=cin, s=s, mm_dtype=mm_dtype)
        z = jnp.maximum(z * scale_ref[...] + shift_ref[...], 0.0)
        # (t*w, s*Cout) -> (t, W_out*Cout): lane order (j, px, co) is already
        # the NHWC-flat output row for output rows  s*i + py.
        out_ref[py] = z.reshape(t, w_src * z.shape[-1]).astype(out_ref.dtype)


# ---------------------------------------------------------------------------
# tiling: largest source-row tile that fits the (v7x-safe) VMEM budget
# ---------------------------------------------------------------------------

def _r8(n):
    return -(-n // 8) * 8


def _r128(n):
    return -(-n // 128) * 128


def _pick_src_row_tile(h, w_src, s, cin, cout, batch,
                       budget_bytes=40 * 2 ** 20, max_out_rows=512):
    """Budget derived for the smallest part (v7x: 64 MiB physical VMEM);
    v5e / v6e (128 MiB) simply get extra headroom."""
    nrt = _n_row_taps(s)
    ncol = s * cout
    # resident padded source (f32), double-buffered by the pipeline
    resident = 2 * (h + 2) * _r8(w_src + 2) * _r128(cin) * 4

    def per_tile(t):
        m = t * w_src
        patches = _r8(m) * _r128(nrt * 3 * cin) * (4 + 2)     # f32 build + bf16 cast
        z = 2 * _r8(m) * _r128(ncol) * 4                       # matmul out + affine copy
        out_blk = 2 * s * t * _r128(w_src * s * cout) * 4      # double-buffered out block
        taps = nrt * 3 * t * _r8(w_src) * _r128(cin) * 4       # tap loads
        return patches + z + out_blk + taps

    cands = [t for t in range(1, h + 1)
             if h % t == 0 and (t % 8 == 0 or t == h) and t * s <= max_out_rows]
    if not cands:
        cands = [h]
    cands.sort(reverse=True)
    best = cands[-1]
    for t in cands:
        if resident + per_tile(t) <= budget_bytes:
            best = t
            break
    # On 2-TensorCore parts make sure there are >= 2 independent grid steps.
    if batch * (h // best) < 2:
        for t in cands:
            if h // t >= 2 and resident + per_tile(t) <= budget_bytes:
                best = t
                break
    return best


# ---------------------------------------------------------------------------
# wrapper
# ---------------------------------------------------------------------------

def reconstruct_forward(x, conv_w, conv_b, bn_gamma, bn_beta,
                        *, kernel_size=3, scale_factor=2,
                        matmul_dtype=jnp.bfloat16):
    """x: (B, n_patch, hidden) -> (B, out_channels, h*s, w*s)  [NCHW out].

    conv_w: (K, K, Cin, Cout)  (= PyTorch conv.weight.permute(2, 3, 1, 0))
    conv_b: (Cout,)  accepted for interface parity; a per-channel constant
            added before training-mode BatchNorm is exactly cancelled by the
            batch-mean subtraction, so it is unused.
    bn_gamma, bn_beta: (Cout,)
    """
    assert kernel_size == 3, "kernel implements the k=3 / padding=1 branch"
    del conv_b  # mathematically redundant before training-mode BatchNorm

    B, n_patch, cin = x.shape
    h = int(round(float(n_patch) ** 0.5))
    assert h * h == n_patch, "n_patch must be a perfect square"
    w_src = h
    s = int(scale_factor)
    assert s >= 1 and float(s) == float(scale_factor)
    H, W = h * s, w_src * s
    cout = conv_w.shape[-1]
    nrt = _n_row_taps(s)
    ncol = s * cout
    L = W * cout                                   # lane-dense output row width

    # (B, n_patch, hidden) is NHWC up to a free reshape; zero-pad by 1 so the
    # conv's own padding lives in the array and the kernel has no edge cases.
    src = x.reshape(B, h, w_src, cin).astype(jnp.float32)
    src_pad = jnp.pad(src, ((0, 0), (1, 1), (1, 1), (0, 0)))

    # Upsample folded into per-row-phase weights; bf16 for the MXU.
    wf = _fold_phase_weights(conv_w.astype(jnp.float32), s).astype(matmul_dtype)

    t = _pick_src_row_tile(h, w_src, s, cin, cout, B)
    n_tiles = h // t
    grid = (B, n_tiles)

    cparams = pltpu.CompilerParams(
        dimension_semantics=("parallel", "parallel"),
        vmem_limit_bytes=48 * 1024 * 1024,   # v7x-safe; headroom on v5e/v6e
    )

    src_spec = pl.BlockSpec((None, h + 2, w_src + 2, cin),
                            lambda b, r: (b, 0, 0, 0))          # resident / batch
    w_spec = pl.BlockSpec((s, nrt * 3 * cin, ncol), lambda b, r: (0, 0, 0))

    # ---------- pass 1: conv -> per-tile BN partial statistics --------------
    stats = pl.pallas_call(
        functools.partial(_stats_kernel, t=t, w_src=w_src, cin=cin, s=s,
                          mm_dtype=matmul_dtype),
        grid=grid,
        in_specs=[src_spec, w_spec],
        out_specs=pl.BlockSpec((None, None, 2, ncol), lambda b, r: (b, r, 0, 0)),
        out_shape=jax.ShapeDtypeStruct((B, n_tiles, 2, ncol), jnp.float32),
        compiler_params=cparams,
    )(src_pad, wf)

    # ---------- fold global batch statistics into per-channel scale/shift ----
    tot = stats.reshape(B, n_tiles, 2, s, cout).sum(axis=(0, 1, 3))   # (2, Cout)
    n = B * H * W
    mean = tot[0] / n
    var = tot[1] / n - mean * mean                 # biased batch variance
    inv = lax.rsqrt(var + 1e-5)
    ch_scale = bn_gamma.reshape(-1).astype(jnp.float32) * inv
    ch_shift = bn_beta.reshape(-1).astype(jnp.float32) - mean * ch_scale
    scale_row = jnp.tile(ch_scale, (s,)).reshape(1, ncol)    # (px, co) order
    shift_row = jnp.tile(ch_shift, (s,)).reshape(1, ncol)

    # ---------- pass 2: conv recompute + BN affine + ReLU --------------------
    out_pm = pl.pallas_call(
        functools.partial(_conv_bn_relu_kernel, t=t, w_src=w_src, cin=cin, s=s,
                          mm_dtype=matmul_dtype),
        grid=grid,
        in_specs=[
            src_spec,
            w_spec,
            pl.BlockSpec((1, ncol), lambda b, r: (0, 0)),
            pl.BlockSpec((1, ncol), lambda b, r: (0, 0)),
        ],
        out_specs=pl.BlockSpec((None, s, t, L), lambda b, r: (b, 0, r, 0)),
        out_shape=jax.ShapeDtypeStruct((B, s, h, L), jnp.float32),
        compiler_params=cparams,
    )(src_pad, wf, scale_row, shift_row)

    # Phase-major (b, py, i, j, px, co) -> NCHW in ONE XLA relayout.
    # TODO(synk): a consumer that accepts NHWC(-flat) output could skip this
    # transpose and the associated extra HBM read+write of the result.
    out = out_pm.reshape(B, s, h, w_src, s, cout)
    out = out.transpose(0, 5, 2, 1, 3, 4).reshape(B, cout, H, W)
    return out


# ---------------------------------------------------------------------------
# pure-JAX reference (training-mode BN) and self-test
# ---------------------------------------------------------------------------

def _reference(x, conv_w, conv_b, gamma, beta, s):
    B, n_patch, cin = x.shape
    h = w = int(round(n_patch ** 0.5))
    xi = jnp.transpose(x, (0, 2, 1)).reshape(B, cin, h, w)
    up = jnp.repeat(jnp.repeat(xi, s, axis=2), s, axis=3)
    out = lax.conv_general_dilated(
        up, conv_w, window_strides=(1, 1), padding=((1, 1), (1, 1)),
        dimension_numbers=("NCHW", "HWIO", "NCHW"))
    out = out + conv_b.reshape(1, -1, 1, 1)
    mean = jnp.mean(out, axis=(0, 2, 3), keepdims=True)
    var = jnp.mean((out - mean) ** 2, axis=(0, 2, 3), keepdims=True)
    out = (out - mean) * lax.rsqrt(var + 1e-5)
    out = out * gamma.reshape(1, -1, 1, 1) + beta.reshape(1, -1, 1, 1)
    return jnp.maximum(out, 0.0)


if __name__ == "__main__":
    # B=2, n_patch=64 (h=w=8), hidden(in_channels)=32, out_channels=16,
    # kernel_size=3 (padding=1), scale_factor=2 -> output (2, 16, 16, 16).
    B, n_patch, hidden = 2, 64, 32
    out_channels, kernel_size, scale_factor = 16, 3, 2

    key = jax.random.PRNGKey(0)
    kx, kw, kb, kg, kbt = jax.random.split(key, 5)

    x = jax.random.normal(kx, (B, n_patch, hidden), dtype=jnp.float32)
    # conv weight stored as (K, K, Cin, Cout) = PyTorch weight.permute(2,3,1,0)
    conv_w = 0.1 * jax.random.normal(
        kw, (kernel_size, kernel_size, hidden, out_channels), dtype=jnp.float32)
    conv_b = 0.01 * jax.random.normal(kb, (out_channels,), dtype=jnp.float32)
    bn_gamma = 1.0 + 0.1 * jax.random.normal(kg, (out_channels,), dtype=jnp.float32)
    bn_beta = 0.1 * jax.random.normal(kbt, (out_channels,), dtype=jnp.float32)

    out = reconstruct_forward(x, conv_w, conv_b, bn_gamma, bn_beta,
                              kernel_size=kernel_size,
                              scale_factor=scale_factor)
    out = jax.block_until_ready(out)

    hh = int(round(n_patch ** 0.5)) * scale_factor
    assert out.shape == (B, out_channels, hh, hh), out.shape

    ref = _reference(x, conv_w, conv_b, bn_gamma, bn_beta, scale_factor)
    max_err = float(jnp.max(jnp.abs(out - ref)))
    mean_err = float(jnp.mean(jnp.abs(out - ref)))
    # bf16 matmul operands (f32 accumulation) vs an all-f32 reference on
    # BatchNorm-normalised (O(1)) outputs.
    assert max_err < 6e-2, f"max abs err vs reference: {max_err}"
    assert mean_err < 1e-2, f"mean abs err vs reference: {mean_err}"
    assert bool(jnp.all(out >= 0.0))  # ReLU output is non-negative
    print("KERNEL_OK")
</pallas_src>

<mosaic_0001>
module attributes {stable_mosaic.version = 11 : i64} {
  func.func @_stats_kernel(%arg0: i32, %arg1: i32, %arg2: memref<1x10x10x32xf32, #tpu.memory_space<vmem>>, %arg3: memref<2x192x32xbf16, #tpu.memory_space<vmem>>, %arg4: memref<1x1x2x32xf32, #tpu.memory_space<vmem>>) attributes {dimension_semantics = [#tpu.dimension_semantics<parallel>, #tpu.dimension_semantics<parallel>], iteration_bounds = array<i64: 2, 1>, scalar_prefetch = 0 : i64, scratch_operands = 0 : i64, tpu.core_type = #tpu.core_type<tc>, window_params = [{transform_indices = @transform_0, window_bounds = array<i64: 1, 10, 10, 32>}, {pipeline_mode = #tpu.pipeline_mode<synchronous>, transform_indices = @transform_1, window_bounds = array<i64: 2, 192, 32>}, {transform_indices = @transform_2, window_bounds = array<i64: 1, 1, 2, 32>}]} {
    %cst = arith.constant 0.000000e+00 : f32
    %0 = vector.broadcast %cst : f32 to vector<2x32xf32>
    %c8_i32 = arith.constant 8 : i32
    %1 = arith.muli %arg1, %c8_i32 : i32
    %c0_i32 = arith.constant 0 : i32
    %2 = arith.addi %1, %c0_i32 : i32
    %c0_i32_0 = arith.constant 0 : i32
    %3 = arith.addi %2, %c0_i32_0 : i32
    %c0 = arith.constant 0 : index
    %4 = arith.index_cast %3 : i32 to index
    %c0_1 = arith.constant 0 : index
    %c0_2 = arith.constant 0 : index
    %5 = vector.load %arg2[%c0, %4, %c0_1, %c0_2] : memref<1x10x10x32xf32, #tpu.memory_space<vmem>>, vector<1x8x8x32xf32>
    %6 = vector.shape_cast %5 : vector<1x8x8x32xf32> to vector<8x8x32xf32>
    %7 = vector.shape_cast %6 : vector<8x8x32xf32> to vector<64x32xf32>
    %c0_3 = arith.constant 0 : index
    %8 = arith.index_cast %3 : i32 to index
    %c1 = arith.constant 1 : index
    %c0_4 = arith.constant 0 : index
    %9 = vector.load %arg2[%c0_3, %8, %c1, %c0_4] : memref<1x10x10x32xf32, #tpu.memory_space<vmem>>, vector<1x8x8x32xf32>
    %10 = vector.shape_cast %9 : vector<1x8x8x32xf32> to vector<8x8x32xf32>
    %11 = vector.shape_cast %10 : vector<8x8x32xf32> to vector<64x32xf32>
    %c0_5 = arith.constant 0 : index
    %12 = arith.index_cast %3 : i32 to index
    %c2 = arith.constant 2 : index
    %c0_6 = arith.constant 0 : index
    %13 = vector.load %arg2[%c0_5, %12, %c2, %c0_6] : memref<1x10x10x32xf32, #tpu.memory_space<vmem>>, vector<1x8x8x32xf32>
    %14 = vector.shape_cast %13 : vector<1x8x8x32xf32> to vector<8x8x32xf32>
    %15 = vector.shape_cast %14 : vector<8x8x32xf32> to vector<64x32xf32>
    %c1_i32 = arith.constant 1 : i32
    %16 = arith.addi %2, %c1_i32 : i32
    %c0_7 = arith.constant 0 : index
    %17 = arith.index_cast %16 : i32 to index
    %c0_8 = arith.constant 0 : index
    %c0_9 = arith.constant 0 : index
    %18 = vector.load %arg2[%c0_7, %17, %c0_8, %c0_9] : memref<1x10x10x32xf32, #tpu.memory_space<vmem>>, vector<1x8x8x32xf32>
    %19 = vector.shape_cast %18 : vector<1x8x8x32xf32> to vector<8x8x32xf32>
    %20 = vector.shape_cast %19 : vector<8x8x32xf32> to vector<64x32xf32>
    %c0_10 = arith.constant 0 : index
    %21 = arith.index_cast %16 : i32 to index
    %c1_11 = arith.constant 1 : index
    %c0_12 = arith.constant 0 : index
    %22 = vector.load %arg2[%c0_10, %21, %c1_11, %c0_12] : memref<1x10x10x32xf32, #tpu.memory_space<vmem>>, vector<1x8x8x32xf32>
    %23 = vector.shape_cast %22 : vector<1x8x8x32xf32> to vector<8x8x32xf32>
    %24 = vector.shape_cast %23 : vector<8x8x32xf32> to vector<64x32xf32>
    %c0_13 = arith.constant 0 : index
    %25 = arith.index_cast %16 : i32 to index
    %c2_14 = arith.constant 2 : index
    %c0_15 = arith.constant 0 : index
    %26 = vector.load %arg2[%c0_13, %25, %c2_14, %c0_15] : memref<1x10x10x32xf32, #tpu.memory_space<vmem>>, vector<1x8x8x32xf32>
    %27 = vector.shape_cast %26 : vector<1x8x8x32xf32> to vector<8x8x32xf32>
    %28 = vector.shape_cast %27 : vector<8x8x32xf32> to vector<64x32xf32>
    %29 = tpu.concatenate %7, %11, %15, %20, %24, %28 in 1 : vector<64x32xf32>, vector<64x32xf32>, vector<64x32xf32>, vector<64x32xf32>, vector<64x32xf32>, vector<64x32xf32> -> vector<64x192xf32>
    %30 = arith.truncf %29 : vector<64x192xf32> to vector<64x192xbf16>
    %c0_16 = arith.constant 0 : index
    %c0_17 = arith.constant 0 : index
    %c0_18 = arith.constant 0 : index
    %31 = vector.load %arg3[%c0_16, %c0_17, %c0_18] : memref<2x192x32xbf16, #tpu.memory_space<vmem>>, vector<1x192x32xbf16>
    %32 = vector.shape_cast %31 : vector<1x192x32xbf16> to vector<192x32xbf16>
    %cst_19 = arith.constant dense<0.000000e+00> : vector<64x32xf32>
    %33 = tpu.matmul %30, %32, %cst_19 {dimension_numbers = #tpu.dot_dimension_numbers<[1], [0], [0], [1], [0, 0, 1, 1], [], []>} : vector<64x192xbf16>, vector<192x32xbf16>, vector<64x32xf32> -> vector<64x32xf32>
    %cst_20 = arith.constant dense<0.000000e+00> : vector<32xf32>
    %34 = vector.multi_reduction <add>, %33, %cst_20 [0] : vector<64x32xf32> to vector<32xf32>
    %35 = vector.shape_cast %34 : vector<32xf32> to vector<1x32xf32>
    %36 = arith.mulf %33, %33 : vector<64x32xf32>
    %cst_21 = arith.constant dense<0.000000e+00> : vector<32xf32>
    %37 = vector.multi_reduction <add>, %36, %cst_21 [0] : vector<64x32xf32> to vector<32xf32>
    %38 = vector.shape_cast %37 : vector<32xf32> to vector<1x32xf32>
    %39 = tpu.concatenate %35, %38 in 0 : vector<1x32xf32>, vector<1x32xf32> -> vector<2x32xf32>
    %40 = arith.addf %0, %39 : vector<2x32xf32>
    %c8_i32_22 = arith.constant 8 : i32
    %41 = arith.muli %arg1, %c8_i32_22 : i32
    %c1_i32_23 = arith.constant 1 : i32
    %42 = arith.addi %41, %c1_i32_23 : i32
    %c0_i32_24 = arith.constant 0 : i32
    %43 = arith.addi %42, %c0_i32_24 : i32
    %c0_25 = arith.constant 0 : index
    %44 = arith.index_cast %43 : i32 to index
    %c0_26 = arith.constant 0 : index
    %c0_27 = arith.constant 0 : index
    %45 = vector.load %arg2[%c0_25, %44, %c0_26, %c0_27] : memref<1x10x10x32xf32, #tpu.memory_space<vmem>>, vector<1x8x8x32xf32>
    %46 = vector.shape_cast %45 : vector<1x8x8x32xf32> to vector<8x8x32xf32>
    %47 = vector.shape_cast %46 : vector<8x8x32xf32> to vector<64x32xf32>
    %c0_28 = arith.constant 0 : index
    %48 = arith.index_cast %43 : i32 to index
    %c1_29 = arith.constant 1 : index
    %c0_30 = arith.constant 0 : index
    %49 = vector.load %arg2[%c0_28, %48, %c1_29, %c0_30] : memref<1x10x10x32xf32, #tpu.memory_space<vmem>>, vector<1x8x8x32xf32>
    %50 = vector.shape_cast %49 : vector<1x8x8x32xf32> to vector<8x8x32xf32>
    %51 = vector.shape_cast %50 : vector<8x8x32xf32> to vector<64x32xf32>
    %c0_31 = arith.constant 0 : index
    %52 = arith.index_cast %43 : i32 to index
    %c2_32 = arith.constant 2 : index
    %c0_33 = arith.constant 0 : index
    %53 = vector.load %arg2[%c0_31, %52, %c2_32, %c0_33] : memref<1x10x10x32xf32, #tpu.memory_space<vmem>>, vector<1x8x8x32xf32>
    %54 = vector.shape_cast %53 : vector<1x8x8x32xf32> to vector<8x8x32xf32>
    %55 = vector.shape_cast %54 : vector<8x8x32xf32> to vector<64x32xf32>
    %c1_i32_34 = arith.constant 1 : i32
    %56 = arith.addi %42, %c1_i32_34 : i32
    %c0_35 = arith.constant 0 : index
    %57 = arith.index_cast %56 : i32 to index
    %c0_36 = arith.constant 0 : index
    %c0_37 = arith.constant 0 : index
    %58 = vector.load %arg2[%c0_35, %57, %c0_36, %c0_37] : memref<1x10x10x32xf32, #tpu.memory_space<vmem>>, vector<1x8x8x32xf32>
    %59 = vector.shape_cast %58 : vector<1x8x8x32xf32> to vector<8x8x32xf32>
    %60 = vector.shape_cast %59 : vector<8x8x32xf32> to vector<64x32xf32>
    %c0_38 = arith.constant 0 : index
    %61 = arith.index_cast %56 : i32 to index
    %c1_39 = arith.constant 1 : index
    %c0_40 = arith.constant 0 : index
    %62 = vector.load %arg2[%c0_38, %61, %c1_39, %c0_40] : memref<1x10x10x32xf32, #tpu.memory_space<vmem>>, vector<1x8x8x32xf32>
    %63 = vector.shape_cast %62 : vector<1x8x8x32xf32> to vector<8x8x32xf32>
    %64 = vector.shape_cast %63 : vector<8x8x32xf32> to vector<64x32xf32>
    %c0_41 = arith.constant 0 : index
    %65 = arith.index_cast %56 : i32 to index
    %c2_42 = arith.constant 2 : index
    %c0_43 = arith.constant 0 : index
    %66 = vector.load %arg2[%c0_41, %65, %c2_42, %c0_43] : memref<1x10x10x32xf32, #tpu.memory_space<vmem>>, vector<1x8x8x32xf32>
    %67 = vector.shape_cast %66 : vector<1x8x8x32xf32> to vector<8x8x32xf32>
    %68 = vector.shape_cast %67 : vector<8x8x32xf32> to vector<64x32xf32>
    %69 = tpu.concatenate %47, %51, %55, %60, %64, %68 in 1 : vector<64x32xf32>, vector<64x32xf32>, vector<64x32xf32>, vector<64x32xf32>, vector<64x32xf32>, vector<64x32xf32> -> vector<64x192xf32>
    %70 = arith.truncf %69 : vector<64x192xf32> to vector<64x192xbf16>
    %c1_44 = arith.constant 1 : index
    %c0_45 = arith.constant 0 : index
    %c0_46 = arith.constant 0 : index
    %71 = vector.load %arg3[%c1_44, %c0_45, %c0_46] : memref<2x192x32xbf16, #tpu.memory_space<vmem>>, vector<1x192x32xbf16>
    %72 = vector.shape_cast %71 : vector<1x192x32xbf16> to vector<192x32xbf16>
    %cst_47 = arith.constant dense<0.000000e+00> : vector<64x32xf32>
    %73 = tpu.matmul %70, %72, %cst_47 {dimension_numbers = #tpu.dot_dimension_numbers<[1], [0], [0], [1], [0, 0, 1, 1], [], []>} : vector<64x192xbf16>, vector<192x32xbf16>, vector<64x32xf32> -> vector<64x32xf32>
    %cst_48 = arith.constant dense<0.000000e+00> : vector<32xf32>
    %74 = vector.multi_reduction <add>, %73, %cst_48 [0] : vector<64x32xf32> to vector<32xf32>
    %75 = vector.shape_cast %74 : vector<32xf32> to vector<1x32xf32>
    %76 = arith.mulf %73, %73 : vector<64x32xf32>
    %cst_49 = arith.constant dense<0.000000e+00> : vector<32xf32>
    %77 = vector.multi_reduction <add>, %76, %cst_49 [0] : vector<64x32xf32> to vector<32xf32>
    %78 = vector.shape_cast %77 : vector<32xf32> to vector<1x32xf32>
    %79 = tpu.concatenate %75, %78 in 0 : vector<1x32xf32>, vector<1x32xf32> -> vector<2x32xf32>
    %80 = arith.addf %40, %79 : vector<2x32xf32>
    %c0_50 = arith.constant 0 : index
    %c0_51 = arith.constant 0 : index
    %c0_52 = arith.constant 0 : index
    %c0_53 = arith.constant 0 : index
    %81 = vector.load %arg4[%c0_50, %c0_51, %c0_52, %c0_53] : memref<1x1x2x32xf32, #tpu.memory_space<vmem>>, vector<1x1x2x32xf32>
    %82 = vector.shape_cast %81 : vector<1x1x2x32xf32> to vector<2x32xf32>
    %83 = vector.shape_cast %80 : vector<2x32xf32> to vector<1x1x2x32xf32>
    tpu.vector_store %arg4[%c0_50, %c0_51, %c0_52, %c0_53], %83 {strides = array<i32>} : memref<1x1x2x32xf32, #tpu.memory_space<vmem>>, vector<1x1x2x32xf32>,
    return
  }
  func.func @transform_0(%arg0: i32, %arg1: i32) -> (i32, i32, i32, i32) {
    %c0_i32 = arith.constant 0 : i32
    %c0_i32_0 = arith.constant 0 : i32
    %c0_i32_1 = arith.constant 0 : i32
    %c0_i32_2 = arith.constant 0 : i32
    return %arg0, %c0_i32, %c0_i32_0, %c0_i32_1 : i32, i32, i32, i32
  }
  func.func @transform_1(%arg0: i32, %arg1: i32) -> (i32, i32, i32) {
    %c0_i32 = arith.constant 0 : i32
    %c0_i32_0 = arith.constant 0 : i32
    %c0_i32_1 = arith.constant 0 : i32
    %c0_i32_2 = arith.constant 0 : i32
    return %c0_i32, %c0_i32_0, %c0_i32_1 : i32, i32, i32
  }
  func.func @transform_2(%arg0: i32, %arg1: i32) -> (i32, i32, i32, i32) {
    %c0_i32 = arith.constant 0 : i32
    %c0_i32_0 = arith.constant 0 : i32
    %c0_i32_1 = arith.constant 0 : i32
    return %arg0, %arg1, %c0_i32, %c0_i32_0 : i32, i32, i32, i32
  }
}

</mosaic_0001>

<bundles_post_ra>
// kernel: tpu_custom_call.1
= control target key start
LH: loop header
LB: loop body
LE: loop exit
PB: predicated region body
PF: predicated region fallthrough
CT: control target
= control target key end

     0   :  { %7 = vsyncpa [#allocation3], 0  ;;  %s2047_s0 = inlined_call_operand.vmem [shape: f32[2,10,10,32], index: 0, kind: input, shape index: {}]   ;;  %s2048_s1 = inlined_call_operand.vmem [shape: bf16[2,192,32], index: 1, kind: input, shape index: {}]   ;;  %s2049_s2 = inlined_call_operand.hbm [shape: f32[2,1,2,32], index: 2, kind: output, shape index: {}]  }
   0x1   :  { %9 = vsyncpa [#allocation3 + $0x1], 0  ;;  %s1575_s9 = smov 0   ;;  %s1577_s10 = smov 0  }
   0x2   :  { %s1579_s11 = smov 0   ;;  %s1581_s12 = smov 0  }
   0x3   :  { %s1583_s13 = smov 0   ;;  %s1585_s14 = smov 0  }
   0x4 LB: > { %s1116_s15 = sadd.s32 4294967295, %s1553_s14   ;;  %s1117_s16 = sadd.s32 4294967294, %s1553_s14   ;;  %s1553_s14 = sphi %s1585_s14, %s15_s14   ;;  %s1549_s13 = sphi %s1583_s13, %s2056_s13   ;;  %s1545_s12 = sphi %s1581_s12, %s2055_s12   ;;  %s1541_s11 = sphi %s1579_s11, %s2054_s11   ;;  %s1537_s10 = sphi %s1577_s10, %s2053_s10   ;;  %s1533_s9 = sphi %s1575_s9, %s2052_s9  }
   0x5   : > { %s27_s17 = sadd.s32 1, %s1549_s13  ;;  %s83_s18 = sadd.s32 1, %s1541_s11 }
   0x6   : > { %p29_p0 = scmp.ge.s32.totalorder %s27_s17, 2  ;;  %p93_p1 = scmp.ne.s32.totalorder %s1541_s11, %s1537_s10 }
   0x7   : > { %p94_p2 = scmp.eq.s32.totalorder %s1116_s15, 1  ;;  %p99_p3 = scmp.ne.s32.totalorder %s1537_s10, %s1533_s9 }
   0x8   : > { %s2058_s17 = smov (%p29_p0, %s27_s17), 0  ;;  %p100_p5 = scmp.eq.s32.totalorder %s1117_s16, 1 }
   0x9   : > { %p1615_p4 = por %p94_p2, %p93_p1  ;;  %s78_s20 = ssub.s32 %s1549_s13, %s2058_s17 }
   0xa   : > { %p1120_p6 = scmp.ge.s32.totalorder %s1553_s14, 1  ;;  %p81_p7 = scmp.eq.s32.totalorder %s78_s20, 0 }
   0xb   : > { %p1622_p8 = por %p100_p5, %p99_p3  ;;  %p129_p9 = scmp.lt.s32.totalorder %s1553_s14, 3 }
   0xc   : > { %s1628_s22 = scalar_select %p81_p7, %s1541_s11, %s83_s18  }
   0xd   : > { %p130_p10 = pnand %p1120_p6, %p129_p9 }
   0xe   : > { %p151_p11 = scmp.lt.s32.totalorder (!%p130_p10), %s1545_s12, 1  ;;  %v1451_v0 = vld [vmem:[%s2048_s1] sm:$0xff] (!%p130_p10)   ;;  %v1555_v1 = vmov (!%p130_p10), 0   ;;  %v1453_v3 = vld [vmem:[%s2048_s1 + $0x8] sm:$0xff] (!%p130_p10)   ;;  %v1455_v5 = vld [vmem:[%s2048_s1 + $0x10] sm:$0xff] (!%p130_p10)   ;;  %s1556_s20 = smov (!%p130_p10), 64  }
   0xf   : > { %133 = sbr.rel (%p130_p10) target bundleno = 459 (0x1cb), region = 28  ;;  %490 = vmatprep.subr.bf16.mxu0 (!%p130_p10), %v1555_v1  ;;  %904 = vmatprep.subr.bf16.mxu1 (!%p130_p10), %v1555_v1  ;;  %v1452_v2 = vld [vmem:[%s2048_s1 + $0x60] sm:$0xff] (!%p130_p10)   ;;  %v1454_v4 = vld [vmem:[%s2048_s1 + $0x68] sm:$0xff] (!%p130_p10)   ;;  %v1456_v6 = vld [vmem:[%s2048_s1 + $0x70] sm:$0xff] (!%p130_p10)   ;;  %s1557_s23 = smov (!%p130_p10), 32   ;;  %vm339_vm0 = vcmask (!%p130_p10), 261120  }
  0x10   : > { %491 = vmatpush1.bf16.msra.mxu0 (!%p130_p10), %v1451_v0  ;;  %905 = vmatpush1.bf16.msra.mxu1 (!%p130_p10), %v1452_v2  ;;  %v1457_v22 = vld [vmem:[%s2048_s1 + $0x18] sm:$0xff] (!%p130_p10)   ;;  %v1459_v27 = vld [vmem:[%s2048_s1 + $0x20] sm:$0xff] (!%p130_p10)   ;;  %s1558_s4 = smov (!%p130_p10), 96   ;;  %v1461_v32 = vld [vmem:[%s2048_s1 + $0x28] sm:$0xff] (!%p130_p10)   ;;  %vm348_vm1 = vcmask (!%p130_p10), 523264   ;;  %vm357_vm2 = vcmask (!%p130_p10), 785408  }
  0x11   : > { %492 = vmatprep.subr.bf16.mxu0 (!%p130_p10), %v1555_v1  ;;  %906 = vmatprep.subr.bf16.mxu1 (!%p130_p10), %v1555_v1  ;;  %v1458_v25 = vld [vmem:[%s2048_s1 + $0x78] sm:$0xff] (!%p130_p10)   ;;  %v1460_v29 = vld [vmem:[%s2048_s1 + $0x80] sm:$0xff] (!%p130_p10)   ;;  %v1462_v34 = vld [vmem:[%s2048_s1 + $0x88] sm:$0xff] (!%p130_p10)   ;;  %vm605_vm3 = vcmask (!%p130_p10), 1040384   ;;  %vm1021_vm4 = vcmask (!%p130_p10), 254976   ;;  %s1559_s18 = smov (!%p130_p10), [#allocation2]  }
  0x12   : > { %v1463_v37 = vld [vmem:[%s2048_s1 + $0x30] sm:$0xff] (!%p130_p10)   ;;  %v1465_v42 = vld [vmem:[%s2048_s1 + $0x38] sm:$0xff] (!%p130_p10)   ;;  %v1467_v45 = vld [vmem:[%s2048_s1 + $0x40] sm:$0xff] (!%p130_p10)   ;;  %s1479_s24 = sshll.u32 (!%p130_p10), %s1559_s18, 4  ;;  %s1480_s24 = int_to_ptr.vmem [resolvable:$false] %s1479_s24 }
  0x13   : > { %v1464_v38 = vld [vmem:[%s2048_s1 + $0x90] sm:$0xff] (!%p130_p10)   ;;  %v1466_v43 = vld [vmem:[%s2048_s1 + $0x98] sm:$0xff] (!%p130_p10)   ;;  %v1468_v49 = vld [vmem:[%s2048_s1 + $0xa0] sm:$0xff] (!%p130_p10)  }
  0x14   : > { %493 = vmatpush1.bf16.msra.mxu0 (!%p130_p10), %v1453_v3  ;;  %907 = vmatpush1.bf16.msra.mxu1 (!%p130_p10), %v1454_v4  ;;  %v1469_v51 = vld [vmem:[%s2048_s1 + $0x48] sm:$0xff] (!%p130_p10)   ;;  %v1471_v56 = vld [vmem:[%s2048_s1 + $0x50] sm:$0xff] (!%p130_p10)   ;;  %v1473_v60 = vld [vmem:[%s2048_s1 + $0x58] sm:$0xff] (!%p130_p10)  }
  0x15   : > { %494 = vmatprep.subr.bf16.mxu0 (!%p130_p10), %v1555_v1  ;;  %908 = vmatprep.subr.bf16.mxu1 (!%p130_p10), %v1555_v1  ;;  %v1470_v54 = vld [vmem:[%s2048_s1 + $0xa8] sm:$0xff] (!%p130_p10)   ;;  %v1472_v58 = vld [vmem:[%s2048_s1 + $0xb0] sm:$0xff] (!%p130_p10)   ;;  %v1474_v63 = vld [vmem:[%s2048_s1 + $0xb8] sm:$0xff] (!%p130_p10)  }
  0x16   : > { %s152_s25 = scalar_select %p151_p11, %s1545_s12, 1 }
  0x18   : > { %s1231_s30 = smul.u32 160, %s152_s25  ;;  %495 = vmatpush1.bf16.msra.mxu0 %v1455_v5  ;;  %909 = vmatpush1.bf16.msra.mxu1 %v1456_v6  ;;  %s1481_s25 = scalar_lea.vmem %s1480_s24, 64 }
  0x19   : > { %496 = vmatprep.subr.bf16.mxu0 %v1555_v1  ;;  %910 = vmatprep.subr.bf16.mxu1 %v1555_v1 }
  0x1a   : > { %s1654_s15 = scalar_lea.vmem %s2047_s0, %s1231_s30 }
  0x1b   : > { %v176_v7 = vld [vmem:[%s1654_s15 + $0x2] sm:$0xff]  ;;  %v177_v8 = vld [vmem:[%s1654_s15 + $0x12] sm:$0xff] }
  0x1c   : > { %v168_v9 = vld [vmem:[%s1654_s15 + $0x1] sm:$0xff]  ;;  %v1301_v10 = vpack.i.bf16 %v177_v8, %v176_v7  ;;  %v1664_v11 = vld [vmem:[%s1654_s15 + $0x11] sm:$0xff]  ;;  %497 = vmatpush1.bf16.msra.mxu0 %v1457_v22  ;;  %911 = vmatpush1.bf16.msra.mxu1 %v1458_v25 }
  0x1d   : > { %v1140_v12 = vld [vmem:[%s1654_s15 + $0x22] sm:$0xff]  ;;  %v1291_v14 = vpack.i.bf16 %v1664_v11, %v168_v9  ;;  %v1180_v17 = vld [vmem:[%s1654_s15 + $0x32] sm:$0xff]  ;;  %498 = vmatprep.subr.bf16.mxu0 %v1555_v1  ;;  %912 = vmatprep.subr.bf16.mxu1 %v1555_v1 }
  0x1e   : > { %v1668_v13 = vld [vmem:[%s1654_s15 + $0x21] sm:$0xff]  ;;  %1302 = vrot.lane.b32.xlu1 %v1301_v10, %s1556_s20  ;;  %v1306_v15 = vpack.i.bf16 %v1140_v12, %v177_v8  ;;  %v1316_v18 = vpack.i.bf16 %v1180_v17, %v1140_v12  ;;  %v1685_v20 = vld [vmem:[%s1654_s15 + $0x30] sm:$0xff] }
  0x1f   : > { %1292 = vrot.lane.b32.xlu0 %v1291_v14, %s1557_s23  ;;  %v1296_v16 = vpack.i.bf16 %v1668_v13, %v1664_v11  ;;  %v1682_v19 = vld [vmem:[%s1654_s15 + $0x20] sm:$0xff]  ;;  %v1688_v21 = vld [vmem:[%s1654_s15 + $0x10] sm:$0xff] }
  0x20   : > { %v1694_v23 = vld [vmem:[%s1654_s15 + $0x31] sm:$0xff]  ;;  %v1697_v24 = vld [vmem:[%s1654_s15 + $0x41] sm:$0xff]  ;;  %v1326_v26 = vpack.i.bf16 %v1685_v20, %v1682_v19  ;;  %v1321_v28 = vpack.i.bf16 %v1682_v19, %v1688_v21  ;;  %499 = vmatpush1.bf16.msra.mxu0 %v1459_v27  ;;  %913 = vmatpush1.bf16.msra.mxu1 %v1460_v29 }
  0x21   : > { %v1142_v30 = vld [vmem:[%s1654_s15 + $0x42] sm:$0xff]  ;;  %v1336_v31 = vpack.i.bf16 %v1697_v24, %v1694_v23  ;;  %v1331_v33 = vpack.i.bf16 %v1694_v23, %v1668_v13  ;;  %500 = vmatprep.subr.bf16.mxu0 %v1555_v1  ;;  %914 = vmatprep.subr.bf16.mxu1 %v1555_v1  ;;  %v1182_v35 = vld [vmem:[%s1654_s15 + $0x52] sm:$0xff] }
  0x22   : > { %1307 = vrot.lane.b32.xlu1 %v1306_v15, %s1557_s23  ;;  %v1346_v36 = vpack.i.bf16 %v1142_v30, %v1180_v17  ;;  %v1743_v39 = vld [vmem:[%s1654_s15 + $0x40] sm:$0xff]  ;;  %v1746_v40 = vld [vmem:[%s1654_s15 + $0x50] sm:$0xff]  ;;  %v1356_v41 = vpack.i.bf16 %v1182_v35, %v1142_v30 }
  0x23   : > { %1297 = vrot.lane.b32.xlu0 %v1296_v16, %s1557_s23  ;;  %v1366_v44 = vpack.i.bf16 %v1746_v40, %v1743_v39  ;;  %v1361_v46 = vpack.i.bf16 %v1743_v39, %v1685_v20  ;;  %v1768_v47 = vld [vmem:[%s1654_s15 + $0x51] sm:$0xff]  ;;  %v1771_v48 = vld [vmem:[%s1654_s15 + $0x61] sm:$0xff] }
  0x24   : > { %501 = vmatpush1.bf16.msra.mxu0 %v1461_v32  ;;  %915 = vmatpush1.bf16.msra.mxu1 %v1462_v34  ;;  %v1376_v50 = vpack.i.bf16 %v1771_v48, %v1768_v47  ;;  %v1371_v52 = vpack.i.bf16 %v1768_v47, %v1697_v24  ;;  %v1144_v53 = vld [vmem:[%s1654_s15 + $0x62] sm:$0xff]  ;;  %v1184_v57 = vld [vmem:[%s1654_s15 + $0x72] sm:$0xff] }
  0x25   : > { %502 = vmatprep.subr.bf16.mxu0 %v1555_v1  ;;  %916 = vmatprep.subr.bf16.mxu1 %v1555_v1  ;;  %v1386_v55 = vpack.i.bf16 %v1144_v53, %v1182_v35  ;;  %v1396_v59 = vpack.i.bf16 %v1184_v57, %v1144_v53  ;;  %v1810_v61 = vld [vmem:[%s1654_s15 + $0x60] sm:$0xff]  ;;  %v1813_v62 = vld [vmem:[%s1654_s15 + $0x70] sm:$0xff] }
  0x26   : > { %1317 = vrot.lane.b32.xlu1 %v1316_v18, %s1557_s23  ;;  %v1406_v0 = vpack.i.bf16 %v1813_v62, %v1810_v61  ;;  %v1401_v2 = vpack.i.bf16 %v1810_v61, %v1746_v40  ;;  %v1827_v3 = vld [vmem:[%s1654_s15 + $0x71] sm:$0xff]  ;;  %v1830_v4 = vld [vmem:[%s1654_s15 + $0x81] sm:$0xff] }
  0x27   : > { %1312 = vrot.lane.b32.xlu0 %v1306_v15, %s1556_s20  ;;  %v1411_v5 = vpack.i.bf16 %v1827_v3, %v1771_v48  ;;  %v1146_v6 = vld [vmem:[%s1654_s15 + $0x82] sm:$0xff]  ;;  %v1186_v8 = vld [vmem:[%s1654_s15 + $0x92] sm:$0xff] }
  0x28   : > { %503 = vmatpush1.bf16.msra.mxu0 %v1463_v37  ;;  %917 = vmatpush1.bf16.msra.mxu1 %v1464_v38  ;;  %v1426_v7 = vpack.i.bf16 %v1146_v6, %v1184_v57  ;;  %v1436_v9 = vpack.i.bf16 %v1186_v8, %v1146_v6  ;;  %v1845_v10 = vld [vmem:[%s1654_s15 + $0x80] sm:$0xff]  ;;  %v1170_v12 = vld [vmem:[%s1654_s15 + $0x90] sm:$0xff] }
  0x29   : > { %504 = vmatprep.subr.bf16.mxu0 %v1555_v1  ;;  %918 = vmatprep.subr.bf16.mxu1 %v1555_v1  ;;  %v1446_v14 = vpack.i.bf16 %v1170_v12, %v1845_v10  ;;  %v1441_v15 = vpack.i.bf16 %v1845_v10, %v1813_v62 }
  0x2a   : > { %1327 = vrot.lane.b32.xlu1 %v1326_v26, %s1558_s4 }
  0x2b   : > { %1322 = vrot.lane.b32.xlu0 %v1321_v28, %s1558_s4 }
  0x2c   : > { %505 = vmatpush1.bf16.msra.mxu0 %v1465_v42  ;;  %919 = vmatpush1.bf16.msra.mxu1 %v1466_v43 }
  0x2d   : > { %506 = vmatprep.subr.bf16.mxu0 %v1555_v1  ;;  %920 = vmatprep.subr.bf16.mxu1 %v1555_v1 }
  0x2e   : > { %1337 = vrot.lane.b32.xlu1 %v1336_v31, %s1557_s23 }
  0x2f   : > { %1332 = vrot.lane.b32.xlu0 %v1331_v33, %s1557_s23  ;;  %v160_v33 = vld [vmem:[%s1654_s15] sm:$0xff] }
  0x30   : > { %507 = vmatpush1.bf16.msra.mxu0 %v1467_v45  ;;  %921 = vmatpush1.bf16.msra.mxu1 %v1468_v49 }
  0x31   : > { %508 = vmatprep.subr.bf16.mxu0 %v1555_v1  ;;  %922 = vmatprep.subr.bf16.mxu1 %v1555_v1 }
  0x32   : > { %1347 = vrot.lane.b32.xlu1 %v1346_v36, %s1557_s23 }
  0x33   : > { %1342 = vrot.lane.b32.xlu0 %v1316_v18, %s1556_s20 }
  0x34   : > { %509 = vmatpush1.bf16.msra.mxu0 %v1469_v51  ;;  %923 = vmatpush1.bf16.msra.mxu1 %v1470_v54 }
  0x35   : > { %510 = vmatprep.subr.bf16.mxu0 %v1555_v1  ;;  %924 = vmatprep.subr.bf16.mxu1 %v1555_v1 }
  0x36   : > { %1357 = vrot.lane.b32.xlu1 %v1356_v41, %s1557_s23 }
  0x37   : > { %1352 = vrot.lane.b32.xlu0 %v1346_v36, %s1556_s20 }
  0x38   : > { %511 = vmatpush1.bf16.msra.mxu0 %v1471_v56  ;;  %925 = vmatpush1.bf16.msra.mxu1 %v1472_v58 }
  0x39   : > { %512 = vmatprep.subr.bf16.mxu0 %v1555_v1  ;;  %926 = vmatprep.subr.bf16.mxu1 %v1555_v1  ;;  %v1416_v1 = vpack.i.bf16 %v1830_v4, %v1827_v3 }
  0x3a   : > { %1367 = vrot.lane.b32.xlu1 %v1366_v44, %s1558_s4 }
  0x3b   : > { %1362 = vrot.lane.b32.xlu0 %v1361_v46, %s1558_s4 }
  0x3c   : > { %513 = vmatpush1.bf16.msra.mxu0 %v1473_v60  ;;  %927 = vmatpush1.bf16.msra.mxu1 %v1474_v63 }
  0x3e   : > { %1377 = vrot.lane.b32.xlu1 %v1376_v50, %s1557_s23 }
  0x3f   : > { %1372 = vrot.lane.b32.xlu0 %v1371_v52, %s1557_s23 }
  0x42   : > { %1387 = vrot.lane.b32.xlu1 %v1386_v55, %s1557_s23 }
  0x43   : > { %1382 = vrot.lane.b32.xlu0 %v1356_v41, %s1556_s20 }
  0x46   : > { %1397 = vrot.lane.b32.xlu1 %v1396_v59, %s1557_s23 }
  0x47   : > { %1392 = vrot.lane.b32.xlu0 %v1386_v55, %s1556_s20 }
  0x4a   : > { %1407 = vrot.lane.b32.xlu1 %v1406_v0, %s1558_s4 }
  0x4b   : > { %1402 = vrot.lane.b32.xlu0 %v1401_v2, %s1558_s4 }
  0x4e   : > { %1417 = vrot.lane.b32.xlu1 %v1416_v1, %s1557_s23 }
  0x4f   : > { %1412 = vrot.lane.b32.xlu0 %v1411_v5, %s1557_s23 }
  0x52   : > { %1427 = vrot.lane.b32.xlu1 %v1426_v7, %s1557_s23 }
  0x53   : > { %1422 = vrot.lane.b32.xlu0 %v1396_v59, %s1556_s20 }
  0x56   : > { %1437 = vrot.lane.b32.xlu1 %v1436_v9, %s1557_s23  ;;  %s1228_s23 = sshll.u32 %s1545_s12, 5 }
  0x57   : > { %1432 = vrot.lane.b32.xlu0 %v1426_v7, %s1556_s20  ;;  %s1998_s8 = scalar_lea.hbm %s2049_s2, %s1228_s23 }
  0x5a   : > { %1447 = vrot.lane.b32.xlu1 %v1446_v14, %s1558_s4 }
  0x5b   : > { %1442 = vrot.lane.b32.xlu0 %v1441_v15, %s1558_s4 }
  0x90   : > { %v1303_v16 = vpop.permute.xlu1 %1302 }
  0x91   : > { %v1293_v17 = vpop.permute.xlu0 %1292  ;;  %v1305_v43 = vunpack.i.h.bf16 %v1303_v16 }
  0x92   : > { %v1295_v29 = vunpack.i.h.bf16 %v1293_v17  ;;  %v1294_v30 = vunpack.i.l.bf16 %v1293_v17 }
  0x94   : > { %v1308_v18 = vpop.permute.xlu1 %1307  ;;  %v340_v46 = vsel %vm339_vm0, %v160_v33, %v1294_v30  ;;  %v341_v49 = vsel %vm339_vm0, %v1688_v21, %v1295_v29 }
  0x95   : > { %v1310_v22 = vunpack.i.h.bf16 %v1308_v18  ;;  %v1309_v25 = vunpack.i.l.bf16 %v1308_v18  ;;  %v1298_v26 = vpop.permute.xlu0 %1297  ;;  %v350_v63 = vsel %vm348_vm1, %v341_v49, %v1305_v43 }
  0x96   : > { %v1300_v34 = vunpack.i.h.bf16 %v1298_v26  ;;  %v1299_v35 = vunpack.i.l.bf16 %v1298_v26 }
  0x97   : > { %v366_v27 = vsel %vm339_vm0, %v1664_v11, %v1309_v25  ;;  %v367_v28 = vsel %vm339_vm0, %v1668_v13, %v1310_v22  ;;  %v1304_v11 = vunpack.i.l.bf16 %v1303_v16 }
  0x98   : > { %v1318_v31 = vpop.permute.xlu1 %1317  ;;  %v375_v32 = vpack.c.bf16 %v367_v28, %v366_v27  ;;  %v756_v52 = vsel %vm339_vm0, %v1682_v19, %v1300_v34  ;;  %v755_v53 = vsel %vm339_vm0, %v1688_v21, %v1299_v35 }
  0x99   : > { %v1320_v36 = vunpack.i.h.bf16 %v1318_v31  ;;  %v1319_v37 = vunpack.i.l.bf16 %v1318_v31  ;;  %v1313_v38 = vpop.permute.xlu0 %1312  ;;  %v349_v60 = vsel %vm348_vm1, %v340_v46, %v1304_v11 }
  0x9a   : > { %v1315_v41 = vunpack.i.h.bf16 %v1313_v38  ;;  %v1314_v42 = vunpack.i.l.bf16 %v1313_v38  ;;  %1159 = vmatprep.mubr.msk.bf16.mxu0 %vm348_vm1, %v375_v32 }
  0x9b   : > { %v779_v44 = vsel %vm339_vm0, %v1668_v13, %v1319_v37  ;;  %v780_v45 = vsel %vm339_vm0, %v1694_v23, %v1320_v36 }
  0x9c   : > { %v1328_v50 = vpop.permute.xlu1 %1327  ;;  %v788_v51 = vpack.c.bf16 %v780_v45, %v779_v44  ;;  %v763_v56 = vsel %vm348_vm1, %v755_v53, %v1314_v42  ;;  %v764_v57 = vsel %vm348_vm1, %v756_v52, %v1315_v41 }
  0x9d   : > { %v1330_v54 = vunpack.i.h.bf16 %v1328_v50  ;;  %v1329_v55 = vunpack.i.l.bf16 %v1328_v50  ;;  %v1323_v13 = vpop.permute.xlu0 %1322 }
  0x9e   : > { %v1325_v58 = vunpack.i.h.bf16 %v1323_v13  ;;  %v1324_v59 = vunpack.i.l.bf16 %v1323_v13  ;;  %1223 = vmatprep.mubr.msk.bf16.mxu1 %vm348_vm1, %v788_v51 }
  0x9f   : > { %v771_v0 = vsel %vm357_vm2, %v763_v56, %v1329_v55  ;;  %v772_v2 = vsel %vm357_vm2, %v764_v57, %v1330_v54 }
  0xa0   : > { %v1338_v21 = vpop.permute.xlu1 %1337  ;;  %v358_v1 = vsel %vm357_vm2, %v349_v60, %v1324_v59  ;;  %v359_v5 = vsel %vm357_vm2, %v350_v63, %v1325_v58  ;;  %v787_v6 = vpack.c.bf16 %v772_v2, %v771_v0 }
  0xa1   : > { %v1333_v7 = vpop.permute.xlu0 %1332  ;;  %v374_v8 = vpack.c.bf16 %v359_v5, %v358_v1  ;;  %v1340_v18 = vunpack.i.h.bf16 %v1338_v21  ;;  %v1339_v22 = vunpack.i.l.bf16 %v1338_v21 }
  0xa2   : > { %937 = vmatmul.mubr.bf16.vlgmr.msra.gmra.mrb[0].mxu1 %v787_v6  ;;  %v1335_v27 = vunpack.i.h.bf16 %v1333_v7  ;;  %v1334_v28 = vunpack.i.l.bf16 %v1333_v7 }
  0xa3   : > { %523 = vmatmul.mubr.bf16.vlgmr.msra.gmra.mrb[0].mxu0 %v374_v8  ;;  %v758_v37 = vsel %vm339_vm0, %v1743_v39, %v1340_v18  ;;  %v757_v38 = vsel %vm339_vm0, %v1685_v20, %v1339_v22 }
  0xa4   : > { %v1348_v9 = vpop.permute.xlu1 %1347  ;;  %v342_v43 = vsel %vm339_vm0, %v1682_v19, %v1334_v28  ;;  %v343_v11 = vsel %vm339_vm0, %v1685_v20, %v1335_v27 }
  0xa5   : > { %v1350_v12 = vunpack.i.h.bf16 %v1348_v9  ;;  %v1349_v14 = vunpack.i.l.bf16 %v1348_v9  ;;  %v1343_v15 = vpop.permute.xlu0 %1342 }
  0xa6   : > { %v1345_v34 = vunpack.i.h.bf16 %v1343_v15  ;;  %v1344_v35 = vunpack.i.l.bf16 %v1343_v15 }
  0xa7   : > { %v369_v16 = vsel %vm339_vm0, %v1697_v24, %v1350_v12  ;;  %v368_v17 = vsel %vm339_vm0, %v1694_v23, %v1349_v14 }
  0xa8   : > { %v377_v25 = vpack.c.bf16 %v369_v16, %v368_v17  ;;  %v1358_v26 = vpop.permute.xlu1 %1357  ;;  %v351_v52 = vsel %vm348_vm1, %v342_v43, %v1344_v35  ;;  %v352_v53 = vsel %vm348_vm1, %v343_v11, %v1345_v34 }
  0xa9   : > { %v1360_v29 = vunpack.i.h.bf16 %v1358_v26  ;;  %v1359_v30 = vunpack.i.l.bf16 %v1358_v26  ;;  %v1353_v31 = vpop.permute.xlu0 %1352 }
  0xaa   : > { %v1355_v32 = vunpack.i.h.bf16 %v1353_v31  ;;  %v1354_v33 = vunpack.i.l.bf16 %v1353_v31  ;;  %1160 = vmatprep.mubr.msk.bf16.mxu0 %vm348_vm1, %v377_v25 }
  0xab   : > { %v782_v36 = vsel %vm339_vm0, %v1768_v47, %v1360_v29  ;;  %v781_v23 = vsel %vm339_vm0, %v1697_v24, %v1359_v30 }
  0xac   : > { %v790_v41 = vpack.c.bf16 %v782_v36, %v781_v23  ;;  %v1368_v42 = vpop.permute.xlu1 %1367  ;;  %v766_v49 = vsel %vm348_vm1, %v758_v37, %v1355_v32  ;;  %v765_v24 = vsel %vm348_vm1, %v757_v38, %v1354_v33 }
  0xad   : > { %v1370_v44 = vunpack.i.h.bf16 %v1368_v42  ;;  %v1369_v45 = vunpack.i.l.bf16 %v1368_v42  ;;  %v1363_v46 = vpop.permute.xlu0 %1362 }
  0xae   : > { %v1365_v50 = vunpack.i.h.bf16 %v1363_v46  ;;  %v1364_v51 = vunpack.i.l.bf16 %v1363_v46  ;;  %1224 = vmatprep.mubr.msk.bf16.mxu1 %vm348_vm1, %v790_v41 }
  0xaf   : > { %v773_v19 = vsel %vm357_vm2, %v765_v24, %v1369_v45  ;;  %v774_v54 = vsel %vm357_vm2, %v766_v49, %v1370_v44 }
  0xb0   : > { %v1378_v20 = vpop.permute.xlu1 %1377  ;;  %v360_v55 = vsel %vm357_vm2, %v351_v52, %v1364_v51  ;;  %v361_v13 = vsel %vm357_vm2, %v352_v53, %v1365_v50  ;;  %v789_v56 = vpack.c.bf16 %v774_v54, %v773_v19 }
  0xb1   : > { %v1373_v57 = vpop.permute.xlu0 %1372  ;;  %v376_v58 = vpack.c.bf16 %v361_v13, %v360_v55  ;;  %v1380_v1 = vunpack.i.h.bf16 %v1378_v20  ;;  %v1379_v5 = vunpack.i.l.bf16 %v1378_v20  ;;  %v1178_v20 = vld [vmem:[%s1654_s15 + $0x91] sm:$0xff]  ;;  %s148_s15 = sand.u32 1, %s1537_s10  }
  0xb2   : > { %945 = vmatmul.mubr.bf16.gmra.mrb[4].mxu1 %v789_v56  ;;  %v1375_v8 = vunpack.i.h.bf16 %v1373_v57  ;;  %v1374_v9 = vunpack.i.l.bf16 %v1373_v57  ;;  %s1121_s20 = sshll.u32 %s148_s15, 1  ;;  %s1024_s16 = scalar_lea.sflag [#allocation3], %s148_s15 }
  0xb3   : > { %531 = vmatmul.mubr.bf16.gmra.mrb[4].mxu0 %v376_v58  ;;  %v760_v26 = vsel %vm339_vm0, %v1810_v61, %v1380_v1  ;;  %v759_v27 = vsel %vm339_vm0, %v1746_v40, %v1379_v5  ;;  %s150_s4 = scalar_lea.vmem [#allocation2], %s1121_s20 }
  0xb4   : > { %v1388_v59 = vpop.permute.xlu1 %1387  ;;  %v344_v30 = vsel %vm339_vm0, %v1743_v39, %v1374_v9  ;;  %v345_v31 = vsel %vm339_vm0, %v1746_v40, %v1375_v8  ;;  %s1038_s5 = sshll.u32 %s150_s4, 4  ;;  %s2000_s5 = int_to_ptr.vmem [resolvable:$true] %s1038_s5 }
  0xb5   : > { %v1390_v60 = vunpack.i.h.bf16 %v1388_v59  ;;  %v1389_v63 = vunpack.i.l.bf16 %v1388_v59  ;;  %v1383_v0 = vpop.permute.xlu0 %1382  ;;  %s1475_s12 = scalar_lea.vmem %s2000_s5, 32  ;;  %p1482_p1 = scmp.lt.s32.totalorder %s2000_s5, %s1480_s24 }
  0xb6   : > { %v1385_v18 = vunpack.i.h.bf16 %v1383_v0  ;;  %v1384_v22 = vunpack.i.l.bf16 %v1383_v0  ;;  %p1476_p12 = scmp.ne.s32.totalorder %s2000_s5, %s1475_s12  ;;  %p1483_p2 = scmp.lt.s32.totalorder %s1481_s25, %s1475_s12 }
  0xb7   : > { %v371_v2 = vsel %vm339_vm0, %v1771_v48, %v1390_v60  ;;  %v370_v21 = vsel %vm339_vm0, %v1768_v47, %v1389_v63 }
  0xb8   : > { %v379_v6 = vpack.c.bf16 %v371_v2, %v370_v21  ;;  %v1398_v7 = vpop.permute.xlu1 %1397  ;;  %v353_v37 = vsel %vm348_vm1, %v344_v30, %v1384_v22  ;;  %v354_v38 = vsel %vm348_vm1, %v345_v31, %v1385_v18  ;;  %p1477_p13 = pnand %p1476_p12, %p1615_p4  ;;  %p1484_p3 = por %p1483_p2, %p1482_p1 }
  0xb9   : > { %v1400_v12 = vunpack.i.h.bf16 %v1398_v7  ;;  %v1399_v14 = vunpack.i.l.bf16 %v1398_v7  ;;  %v1393_v15 = vpop.permute.xlu0 %1392 }
  0xba   : > { %v1395_v16 = vunpack.i.h.bf16 %v1393_v15  ;;  %v1394_v17 = vunpack.i.l.bf16 %v1393_v15  ;;  %1161 = vmatprep.mubr.msk.bf16.mxu0 %vm348_vm1, %v379_v6  ;;  %p1478_p0 = pneg %p1477_p13 }
  0xbb   : > { %v784_v25 = vsel %vm339_vm0, %v1827_v3, %v1400_v12  ;;  %v783_v47 = vsel %vm339_vm0, %v1771_v48, %v1399_v14 }
  0xbc   : > { %v792_v28 = vpack.c.bf16 %v784_v25, %v783_v47  ;;  %v1408_v29 = vpop.permute.xlu1 %1407  ;;  %v768_v35 = vsel %vm348_vm1, %v760_v26, %v1395_v16  ;;  %v767_v48 = vsel %vm348_vm1, %v759_v27, %v1394_v17  ;;  %p1485_p5 = pnand %p1484_p3, %p1478_p0 }
  0xbd   : > { %v1410_v32 = vunpack.i.h.bf16 %v1408_v29  ;;  %v1409_v33 = vunpack.i.l.bf16 %v1408_v29  ;;  %v1403_v34 = vpop.permute.xlu0 %1402 }
  0xbe   : > { %v1405_v36 = vunpack.i.h.bf16 %v1403_v34  ;;  %v1404_v23 = vunpack.i.l.bf16 %v1403_v34  ;;  %1225 = vmatprep.mubr.msk.bf16.mxu1 %vm348_vm1, %v792_v28 }
  0xbf   : > { %v775_v39 = vsel %vm357_vm2, %v767_v48, %v1409_v33  ;;  %v776_v41 = vsel %vm357_vm2, %v768_v35, %v1410_v32 }
  0xc0   : > { %v1418_v40 = vpop.permute.xlu1 %1417  ;;  %v362_v42 = vsel %vm357_vm2, %v353_v37, %v1404_v23  ;;  %v363_v43 = vsel %vm357_vm2, %v354_v38, %v1405_v36  ;;  %v791_v11 = vpack.c.bf16 %v776_v41, %v775_v39 }
  0xc1   : > { %v1413_v44 = vpop.permute.xlu0 %1412  ;;  %v378_v45 = vpack.c.bf16 %v363_v43, %v362_v42  ;;  %v1420_v53 = vunpack.i.h.bf16 %v1418_v40  ;;  %v1419_v19 = vunpack.i.l.bf16 %v1418_v40 }
  0xc2   : > { %953 = vmatmul.mubr.bf16.gmra.mrb[8].mxu1 %v791_v11  ;;  %v1415_v13 = vunpack.i.h.bf16 %v1413_v44  ;;  %v1414_v56 = vunpack.i.l.bf16 %v1413_v44 }
  0xc3   : > { %539 = vmatmul.mubr.bf16.gmra.mrb[8].mxu0 %v378_v45  ;;  %v762_v1 = vsel %vm339_vm0, %v1845_v10, %v1420_v53  ;;  %v761_v5 = vsel %vm339_vm0, %v1813_v62, %v1419_v19 }
  0xc4   : > { %v1428_v46 = vpop.permute.xlu1 %1427  ;;  %v346_v8 = vsel %vm339_vm0, %v1810_v61, %v1414_v56  ;;  %v347_v9 = vsel %vm339_vm0, %v1813_v62, %v1415_v13 }
  0xc5   : > { %v1430_v49 = vunpack.i.h.bf16 %v1428_v46  ;;  %v1429_v24 = vunpack.i.l.bf16 %v1428_v46  ;;  %v1423_v50 = vpop.permute.xlu0 %1422 }
  0xc6   : > { %v1425_v0 = vunpack.i.h.bf16 %v1423_v50  ;;  %v1424_v2 = vunpack.i.l.bf16 %v1423_v50 }
  0xc7   : > { %v373_v51 = vsel %vm339_vm0, %v1830_v4, %v1430_v49  ;;  %v372_v52 = vsel %vm339_vm0, %v1827_v3, %v1429_v24 }
  0xc8   : > { %v381_v54 = vpack.c.bf16 %v373_v51, %v372_v52  ;;  %v1438_v55 = vpop.permute.xlu1 %1437  ;;  %v355_v18 = vsel %vm348_vm1, %v346_v8, %v1424_v2  ;;  %v356_v22 = vsel %vm348_vm1, %v347_v9, %v1425_v0 }
  0xc9   : > { %v1440_v57 = vunpack.i.h.bf16 %v1438_v55  ;;  %v1439_v58 = vunpack.i.l.bf16 %v1438_v55  ;;  %v1433_v59 = vpop.permute.xlu0 %1432 }
  0xca   : > { %v1435_v60 = vunpack.i.h.bf16 %v1433_v59  ;;  %v1434_v63 = vunpack.i.l.bf16 %v1433_v59  ;;  %1162 = vmatprep.mubr.msk.bf16.mxu0 %vm348_vm1, %v381_v54 }
  0xcb   : > { %v786_v21 = vsel %vm339_vm0, %v1178_v20, %v1440_v57  ;;  %v785_v3 = vsel %vm339_vm0, %v1830_v4, %v1439_v58 }
  0xcc   : > { %v794_v6 = vpack.c.bf16 %v786_v21, %v785_v3  ;;  %v1448_v7 = vpop.permute.xlu1 %1447  ;;  %v770_v16 = vsel %vm348_vm1, %v762_v1, %v1435_v60  ;;  %v769_v4 = vsel %vm348_vm1, %v761_v5, %v1434_v63 }
  0xcd   : > { %v1450_v12 = vunpack.i.h.bf16 %v1448_v7  ;;  %v1449_v14 = vunpack.i.l.bf16 %v1448_v7  ;;  %v1443_v15 = vpop.permute.xlu0 %1442 }
  0xce   : > { %v1445_v17 = vunpack.i.h.bf16 %v1443_v15  ;;  %v1444_v10 = vunpack.i.l.bf16 %v1443_v15  ;;  %1226 = vmatprep.mubr.msk.bf16.mxu1 %vm348_vm1, %v794_v6 }
  0xcf   : > { %v777_v61 = vsel %vm357_vm2, %v769_v4, %v1449_v14  ;;  %v778_v25 = vsel %vm357_vm2, %v770_v16, %v1450_v12 }
  0xd0   : > { %v364_v62 = vsel %vm357_vm2, %v355_v18, %v1444_v10  ;;  %v365_v47 = vsel %vm357_vm2, %v356_v22, %v1445_v17  ;;  %v793_v26 = vpack.c.bf16 %v778_v25, %v777_v61 }
  0xd1   : > { %v380_v27 = vpack.c.bf16 %v365_v47, %v364_v62 }
  0xd2   : > { %961 = vmatmul.mubr.bf16.gmra.mrb[12].mxu1 %v793_v26 }
  0xd3   : > { %547 = vmatmul.mubr.bf16.gmra.mrb[12].mxu0 %v380_v27 }
 0x175   : > { %v938_v28 = vpop.f32.mrb[0].mxu1 }
 0x176   : > { %v524_v29 = vpop.f32.mrb[0].mxu0  ;;  %v990_v30 = vmul.f32 %v938_v28, %v938_v28  ;;  %v940_v31 = vpop.f32.mrb[1].mxu1  ;;  %v969_v35 = vsel %vm339_vm0, %v938_v28, 0.0 }
 0x177   : > { %v576_v32 = vmul.f32 %v524_v29, %v524_v29  ;;  %v526_v33 = vpop.f32.mrb[1].mxu0  ;;  %v941_v34 = vpop.f32.mrb[2].mxu1  ;;  %v555_v38 = vsel %vm339_vm0, %v524_v29, 0.0 }
 0x178   : > { %v527_v48 = vpop.f32.mrb[2].mxu0  ;;  %v970_v36 = vsel %vm339_vm0, %v941_v34, 0.0  ;;  %v991_v23 = vmul.f32 %v941_v34, %v941_v34  ;;  %v943_v37 = vpop.f32.mrb[3].mxu1  ;;  %v998_v43 = vsel %vm339_vm0, %v990_v30, 0.0 }
 0x179   : > { %v556_v39 = vsel %vm339_vm0, %v527_v48, 0.0  ;;  %v577_v41 = vmul.f32 %v527_v48, %v527_v48  ;;  %v971_v40 = vadd.f32 %v970_v36, %v969_v35  ;;  %v529_v42 = vpop.f32.mrb[3].mxu0  ;;  %v584_v45 = vsel %vm339_vm0, %v576_v32, 0.0 }
 0x17a   : > { %v557_v11 = vadd.f32 %v556_v39, %v555_v38  ;;  %v999_v44 = vsel %vm339_vm0, %v991_v23, 0.0 }
 0x17b   : > { %v585_v46 = vsel %vm339_vm0, %v577_v41, 0.0  ;;  %v1000_v49 = vadd.f32 %v999_v44, %v998_v43 }
 0x17c   : > { %v586_v24 = vadd.f32 %v585_v46, %v584_v45 }
 0x185   : > { %v946_v50 = vpop.f32.mrb[4].mxu1 }
 0x186   : > { %v532_v51 = vpop.f32.mrb[4].mxu0  ;;  %v972_v52 = vsel %vm339_vm0, %v946_v50, 0.0  ;;  %v992_v53 = vmul.f32 %v946_v50, %v946_v50  ;;  %v948_v19 = vpop.f32.mrb[5].mxu1 }
 0x187   : > { %v558_v54 = vsel %vm339_vm0, %v532_v51, 0.0  ;;  %v578_v20 = vmul.f32 %v532_v51, %v532_v51  ;;  %v973_v55 = vadd.f32 %v972_v52, %v971_v40  ;;  %v534_v13 = vpop.f32.mrb[5].mxu0  ;;  %v949_v56 = vpop.f32.mrb[6].mxu1 }
 0x188   : > { %v559_v57 = vadd.f32 %v558_v54, %v557_v11  ;;  %v1001_v58 = vsel %vm339_vm0, %v992_v53, 0.0  ;;  %v535_v59 = vpop.f32.mrb[6].mxu0  ;;  %v974_v60 = vsel %vm339_vm0, %v949_v56, 0.0  ;;  %v993_v63 = vmul.f32 %v949_v56, %v949_v56  ;;  %v951_v0 = vpop.f32.mrb[7].mxu1 }
 0x189   : > { %v587_v2 = vsel %vm339_vm0, %v578_v20, 0.0  ;;  %v1002_v21 = vadd.f32 %v1001_v58, %v1000_v49  ;;  %v560_v3 = vsel %vm339_vm0, %v535_v59, 0.0  ;;  %v579_v1 = vmul.f32 %v535_v59, %v535_v59  ;;  %v537_v5 = vpop.f32.mrb[7].mxu0 }
 0x18a   : > { %v588_v6 = vadd.f32 %v587_v2, %v586_v24  ;;  %v561_v7 = vadd.f32 %v560_v3, %v559_v57  ;;  %v975_v8 = vadd.f32 %v974_v60, %v973_v55  ;;  %v1003_v9 = vsel %vm339_vm0, %v993_v63, 0.0 }
 0x18b   : > { %v589_v12 = vsel %vm339_vm0, %v579_v1, 0.0  ;;  %v1004_v14 = vadd.f32 %v1003_v9, %v1002_v21 }
 0x18c   : > { %v590_v15 = vadd.f32 %v589_v12, %v588_v6 }
 0x195   : > { %v954_v16 = vpop.f32.mrb[8].mxu1 }
 0x196   : > { %v540_v4 = vpop.f32.mrb[8].mxu0  ;;  %v976_v17 = vsel %vm339_vm0, %v954_v16, 0.0  ;;  %v994_v10 = vmul.f32 %v954_v16, %v954_v16  ;;  %v956_v18 = vpop.f32.mrb[9].mxu1 }
 0x197   : > { %v562_v22 = vsel %vm339_vm0, %v540_v4, 0.0  ;;  %v580_v61 = vmul.f32 %v540_v4, %v540_v4  ;;  %v977_v25 = vadd.f32 %v976_v17, %v975_v8  ;;  %v542_v62 = vpop.f32.mrb[9].mxu0  ;;  %v957_v47 = vpop.f32.mrb[10].mxu1 }
 0x198   : > { %v563_v26 = vadd.f32 %v562_v22, %v561_v7  ;;  %v1005_v27 = vsel %vm339_vm0, %v994_v10, 0.0  ;;  %v543_v28 = vpop.f32.mrb[10].mxu0  ;;  %v978_v29 = vsel %vm339_vm0, %v957_v47, 0.0  ;;  %v995_v30 = vmul.f32 %v957_v47, %v957_v47  ;;  %v959_v31 = vpop.f32.mrb[11].mxu1 }
 0x199   : > { %v591_v32 = vsel %vm339_vm0, %v580_v61, 0.0  ;;  %v1006_v33 = vadd.f32 %v1005_v27, %v1004_v14  ;;  %v564_v34 = vsel %vm339_vm0, %v543_v28, 0.0  ;;  %v581_v35 = vmul.f32 %v543_v28, %v543_v28  ;;  %v545_v48 = vpop.f32.mrb[11].mxu0 }
 0x19a   : > { %v592_v36 = vadd.f32 %v591_v32, %v590_v15  ;;  %v565_v23 = vadd.f32 %v564_v34, %v563_v26  ;;  %v979_v37 = vadd.f32 %v978_v29, %v977_v25  ;;  %v1007_v38 = vsel %vm339_vm0, %v995_v30, 0.0 }
 0x19b   : > { %v593_v39 = vsel %vm339_vm0, %v581_v35, 0.0  ;;  %v1008_v41 = vadd.f32 %v1007_v38, %v1006_v33 }
 0x19c   : > { %v594_v40 = vadd.f32 %v593_v39, %v592_v36 }
 0x1a5   : > { %v962_v42 = vpop.f32.mrb[12].mxu1 }
 0x1a6   : > { %v548_v43 = vpop.f32.mrb[12].mxu0  ;;  %v980_v11 = vsel %vm339_vm0, %v962_v42, 0.0  ;;  %v996_v44 = vmul.f32 %v962_v42, %v962_v42  ;;  %v964_v45 = vpop.f32.mrb[13].mxu1 }
 0x1a7   : > { %v566_v46 = vsel %vm339_vm0, %v548_v43, 0.0  ;;  %v582_v49 = vmul.f32 %v548_v43, %v548_v43  ;;  %v981_v24 = vadd.f32 %v980_v11, %v979_v37  ;;  %v550_v50 = vpop.f32.mrb[13].mxu0  ;;  %v965_v51 = vpop.f32.mrb[14].mxu1 }
 0x1a8   : > { %v567_v52 = vadd.f32 %v566_v46, %v565_v23  ;;  %v1009_v53 = vsel %vm339_vm0, %v996_v44, 0.0  ;;  %v551_v19 = vpop.f32.mrb[14].mxu0  ;;  %v982_v54 = vsel %vm339_vm0, %v965_v51, 0.0  ;;  %v997_v20 = vmul.f32 %v965_v51, %v965_v51  ;;  %v967_v55 = vpop.f32.mrb[15].mxu1 }
 0x1a9   : > { %v595_v13 = vsel %vm339_vm0, %v582_v49, 0.0  ;;  %v1010_v56 = vadd.f32 %v1009_v53, %v1008_v41  ;;  %v568_v57 = vsel %vm339_vm0, %v551_v19, 0.0  ;;  %v583_v58 = vmul.f32 %v551_v19, %v551_v19  ;;  %v553_v59 = vpop.f32.mrb[15].mxu0 }
 0x1aa   : > { %v596_v60 = vadd.f32 %v595_v13, %v594_v40  ;;  %v569_v63 = vadd.f32 %v568_v57, %v567_v52  ;;  %v983_v0 = vadd.f32 %v982_v54, %v981_v24  ;;  %v1011_v2 = vsel %vm339_vm0, %v997_v20, 0.0 }
 0x1ab   : > { %v597_v21 = vsel %vm339_vm0, %v583_v58, 0.0  ;;  %v1012_v3 = vadd.f32 %v1011_v2, %v1010_v56 }
 0x1ac   : > { %v570_v1 = vrot.slane %v569_v63, 4  ;;  %v598_v5 = vadd.f32 %v597_v21, %v596_v60  ;;  %v984_v6 = vrot.slane %v983_v0, 4 }
 0x1ad   : > { %v1013_v7 = vrot.slane %v1012_v3, 4 }
 0x1ae   : > { %v571_v8 = vadd.f32 %v570_v1, %v569_v63  ;;  %v599_v9 = vrot.slane %v598_v5, 4  ;;  %v985_v12 = vadd.f32 %v984_v6, %v983_v0 }
 0x1af   : > { %v1014_v14 = vadd.f32 %v1013_v7, %v1012_v3 }
 0x1b0   : > { %v572_v15 = vrot.slane %v571_v8, 2  ;;  %v600_v16 = vadd.f32 %v599_v9, %v598_v5  ;;  %v986_v4 = vrot.slane %v985_v12, 2 }
 0x1b1   : > { %v1015_v17 = vrot.slane %v1014_v14, 2 }
 0x1b2   : > { %v573_v10 = vadd.f32 %v572_v15, %v571_v8  ;;  %v601_v18 = vrot.slane %v600_v16, 2  ;;  %v987_v22 = vadd.f32 %v986_v4, %v985_v12 }
 0x1b3   : > { %v1016_v61 = vadd.f32 %v1015_v17, %v1014_v14 }
 0x1b4   : > { %v574_v25 = vrot.slane %v573_v10, 1  ;;  %v602_v62 = vadd.f32 %v601_v18, %v600_v16  ;;  %v988_v47 = vrot.slane %v987_v22, 1 }
 0x1b5   : > { %v1017_v26 = vrot.slane %v1016_v61, 1 }
 0x1b6   : > { %v603_v27 = vrot.slane %v602_v62, 1  ;;  %v989_v28 = vadd.f32 %v988_v47, %v987_v22  ;;  %v575_v30 = vadd.f32 %v574_v25, %v573_v10 }
 0x1b7   : > { %v1018_v29 = vadd.f32 %v1017_v26, %v1016_v61 }
 0x1b8   : > { %v604_v31 = vadd.f32 %v603_v27, %v602_v62 }
 0x1b9   : > { %v1019_v32 = vsel %vm605_vm3, %v989_v28, %v1018_v29 }
 0x1ba   : > { %v606_v33 = vsel %vm605_vm3, %v575_v30, %v604_v31 }
 0x1bb   : > { %v1020_v34 = vadd.f32 %v1019_v32, %v606_v33 }
 0x1bd   : > { %1022 = vst.msk [vmem:[%s150_s4] sm:$0x3] %vm1021_vm4, %v1020_v34 }
 0x1be   : > { %1488 = shalt.err (!%p1485_p5)
}
 0x1bf   : > { %s1489_s26 = scalar_lea.hbm %s1998_s8, 32  ;;  %s1493_s29 = scalar_lea.hbm %s2049_s2, 64 }
 0x1c0   : > { %p1490_p6 = scmp.ne.s32.totalorder %s1998_s8, %s1489_s26  ;;  %p1494_p10 = scmp.lt.u32.totalorder %s1998_s8, %s2049_s2 }
 0x1c1   : > { %p1495_p11 = scmp.lt.u32.totalorder %s1493_s29, %s1489_s26  ;;  %p1497_p13 = scmp.lt.u32.totalorder %s1489_s26, %s1998_s8 }
 0x1c2   : > { %p1491_p7 = pnand %p1490_p6, %p1615_p4 }
 0x1c3   : > { %p1496_p12 = por %p1495_p11, %p1494_p10 }
 0x1c4   : > { %p1492_p9 = pneg %p1491_p7 }
 0x1c5   : > { %p1498_p0 = por %p1497_p13, %p1496_p12 }
 0x1c7   : > { %p1499_p1 = pnand %p1498_p0, %p1492_p9 }
 0x1c9   : > { %1502 = shalt.err (!%p1499_p1)
}
 0x1ca   : > { %1232 = dma.vmem_to_hbm [thread:$0]  (%p1615_p4), %s2000_s5, 32, %s1998_s8, %s1024_s16  }
 0x1cb PF: > { %p1238_p2 = scmp.ge.s32.totalorder %s1553_s14, 2  ;;  %s1050_s15 = sand.u32 1, %s1533_s9  }
 0x1cc   : > { %s1051_s20 = scalar_lea.sflag [#allocation3], %s1050_s15 }
 0x1cd   : > { %p1235_p3 = pnand %p1238_p2, %p1622_p8 }
 0x1cf   : > { %1528 = dma.done.wait (!%p1235_p3), %s1051_s20, 32  }
 0x1d0   : > { %1530 = vsyncadd (!%p1235_p3), %s1051_s20, 4294967264  ;;  %s15_s14 = sadd.s32 1, %s1553_s14   ;;  %s2052_s9 = smov %s1537_s10 }
 0x1d1   : > { %p12_p5 = scmp.ge.s32.totalorder %s15_s14, 4   ;;  %s2053_s10 = smov %s1541_s11 }
 0x1d2   : > { %s2054_s11 = smov %s1628_s22  ;;  %s2055_s12 = smov %s1549_s13 }
 0x1d3   : > { %s2056_s13 = smov %s2058_s17  ;;  %14 = sbr.rel (!%p12_p5) target bundleno = 4 (0x4), region = 67 }
 0x1da   :  { %1056 = vsyncpa [#allocation3], 1 }
 0x1db   :  { %1058 = vsyncpa [#allocation3 + $0x1], 1 }

</bundles_post_ra>
